<compile_context>
chip_gen: v6e
topology: v6e:2x2x1
jax: 0.10.0
libtpu: 0.0.40
codegen_flags: <defaults>
</compile_context>

<pallas_src>
import functools
import math
import numpy as np

import jax
import jax.numpy as jnp
from jax.experimental import pallas as pl
from jax.experimental.pallas import tpu as pltpu


_VMEM_BUDGET = 48 * 1024 * 1024     # explicit limit: fits v5e/v6e and v7x(64MiB)


# ----------------------------------------------------------------------------
# Pallas kernel: banded polyphase resample as per-output-tile matmuls.
#   out[:, j*tn:(j+1)*tn] = sum_{k=0,1} x[:, (kblk[j]+k)*kb : +kb] @ Wb[j, k]
# Wb holds only the non-zero band of the resampling matrix for each output
# tile; kblk[] (scalar-prefetched to SMEM) selects which aligned K blocks of x
# to stream for tile j.
# ----------------------------------------------------------------------------
def _banded_resample_kernel(kblk_ref, x_ref, w_ref, o_ref):
    del kblk_ref  # consumed only by the index_maps

    @pl.when(pl.program_id(2) == 0)
    def _init():
        o_ref[...] = jnp.zeros_like(o_ref)

    # accumulate directly into the f32, VMEM-resident output block (no scratch)
    o_ref[...] += jnp.dot(x_ref[...], w_ref[...],
                          preferred_element_type=jnp.float32)


def pallas_banded_resample(x_pad, w_band, kblk, *, tm, tn, kb, num_j):
    Mp, Kp = x_pad.shape
    assert Mp % tm == 0 and Kp % kb == 0
    assert w_band.shape == (num_j * 2 * kb, tn)
    Np = num_j * tn
    return pl.pallas_call(
        _banded_resample_kernel,
        out_shape=jax.ShapeDtypeStruct((Mp, Np), jnp.float32),
        grid_spec=pltpu.PrefetchScalarGridSpec(
            num_scalar_prefetch=1,
            grid=(Mp // tm, num_j, 2),
            in_specs=[
                # x: data-dependent K block — only the band of this output tile
                pl.BlockSpec((tm, kb), lambda i, j, k, kblk: (i, kblk[j] + k)),
                # banded weights: the (j, k) slab of the band matrix
                pl.BlockSpec((kb, tn), lambda i, j, k, kblk: (j * 2 + k, 0)),
            ],
            out_specs=pl.BlockSpec((tm, tn), lambda i, j, k, kblk: (i, j)),
        ),
        compiler_params=pltpu.CompilerParams(
            dimension_semantics=("parallel", "parallel", "arbitrary"),
            vmem_limit_bytes=_VMEM_BUDGET),
    )(kblk, x_pad, w_band)


# ----------------------------------------------------------------------------
# Host-side glue: Kaldi/torchaudio-style sinc weights, banded plan (cached).
# ----------------------------------------------------------------------------
def _round_up(v, m):
    return ((v + m - 1) // m) * m


def _output_samples(input_num_samp, orig_freq, new_freq):
    samp_in, samp_out = int(orig_freq), int(new_freq)
    tick_freq = abs(samp_in * samp_out) // math.gcd(samp_in, samp_out)
    ticks_per_input_period = tick_freq // samp_in
    interval_length = input_num_samp * ticks_per_input_period
    if interval_length <= 0:
        return 0
    ticks_per_output_period = tick_freq // samp_out
    last_output_samp = interval_length // ticks_per_output_period
    if last_output_samp * ticks_per_output_period == interval_length:
        last_output_samp -= 1
    return last_output_samp + 1


def _indices_and_weights(orig_freq, new_freq, lowpass_filter_width):
    min_freq = min(orig_freq, new_freq)
    lowpass_cutoff = 0.99 * 0.5 * min_freq
    assert lowpass_cutoff * 2 <= min_freq
    window_width = lowpass_filter_width / (2.0 * lowpass_cutoff)

    output_samples = new_freq // math.gcd(orig_freq, new_freq)
    output_t = np.arange(output_samples, dtype=np.float64) / new_freq
    min_t = output_t - window_width
    max_t = output_t + window_width
    min_input_index = np.ceil(min_t * orig_freq)
    max_input_index = np.floor(max_t * orig_freq)
    num_indices = max_input_index - min_input_index + 1
    max_weight_width = int(num_indices.max())

    j = np.arange(max_weight_width, dtype=np.float64)
    input_index = min_input_index[:, None] + j[None, :]
    delta_t = input_index / orig_freq - output_t[:, None]

    inside = np.abs(delta_t) < window_width
    weights = np.where(
        inside,
        0.5 * (1.0 + np.cos(2.0 * math.pi * lowpass_cutoff /
                            lowpass_filter_width * delta_t)),
        0.0)
    t_eq_zero = delta_t == 0.0
    safe_delta = np.where(t_eq_zero, 1.0, delta_t)
    sinc = np.where(
        t_eq_zero,
        2.0 * lowpass_cutoff,
        np.sin(2.0 * math.pi * lowpass_cutoff * delta_t) / (math.pi * safe_delta))
    weights = weights * sinc / orig_freq

    return min_input_index.astype(np.int64), weights.astype(np.float32)


@functools.lru_cache(maxsize=64)
def _band_plan(orig_freq, new_freq, lowpass_filter_width, wave_len, n_rows):
    """Precompute the banded polyphase weights + tiling; keep them on device."""
    base_freq = math.gcd(orig_freq, new_freq)
    conv_stride = orig_freq // base_freq
    P = new_freq // base_freq                       # output phases per period
    first_indices, weights = _indices_and_weights(
        orig_freq, new_freq, lowpass_filter_width)
    W = weights.shape[1]
    tot_out = _output_samples(wave_len, orig_freq, new_freq)

    # per output column n: input taps start(n) .. start(n)+W-1 (zero-padded)
    n = np.arange(tot_out, dtype=np.int64)
    phase = n % P
    m = n // P
    start = first_indices[phase] + m * conv_stride
    pos = start[:, None] + np.arange(W, dtype=np.int64)[None, :]   # (tot_out, W)
    valid = (pos >= 0) & (pos < wave_len)
    wvals = weights[phase]                                          # (tot_out, W)
    if tot_out > 0:
        lo = np.where(valid, pos, wave_len).min(axis=1)   # first valid tap
        hi = np.where(valid, pos, -1).max(axis=1)         # last valid tap
    else:
        lo = hi = np.zeros((0,), dtype=np.int64)

    # ---- row tiling (M axis) ----
    M = max(int(n_rows), 1)
    if M <= 256:
        Mp = _round_up(M, 8)
        tm = Mp
    else:
        tm = 256
        Mp = _round_up(M, tm)

    # ---- output tiling: large tn, >=2 tiles when possible, VMEM-bounded ----
    Np0 = _round_up(max(tot_out, 1), 128)
    if Np0 <= 256:
        tn = Np0
    else:
        tn = min(512, _round_up((Np0 + 1) // 2, 128))

    def _derive(tn_):
        Np_ = _round_up(Np0, tn_)
        num_j_ = Np_ // tn_
        jt_ = n // tn_
        band_lo = np.full(num_j_, wave_len, dtype=np.int64)
        band_hi = np.full(num_j_, -1, dtype=np.int64)
        if tot_out > 0:
            np.minimum.at(band_lo, jt_, lo)
            np.maximum.at(band_hi, jt_, hi)
        band_hi = np.maximum(band_hi, 0)
        band_lo = np.minimum(band_lo, band_hi)
        span = int((band_hi - band_lo).max()) + 1
        kb_ = max(128, _round_up(span, 128))          # band fits in 2 kb-blocks
        kblk_ = (band_lo // kb_).astype(np.int32)     # aligned K-block per tile
        return Np_, num_j_, jt_, kb_, kblk_

    while True:
        Np, num_j, jt, kb, kblk = _derive(tn)
        footprint = 2 * 4 * (tm * kb + kb * tn + tm * tn)   # double-buffered
        if footprint <= _VMEM_BUDGET // 2 or tn <= 128:
            break
        tn = max(128, tn // 2)

    Kp = (int(kblk.max()) + 2) * kb                   # padded input length

    # ---- banded weight slab: Wb[j, r, c] = R[j*tn + c, kblk[j]*kb + r] ----
    Wb = np.zeros((num_j, 2 * kb, tn), dtype=np.float32)
    if tot_out > 0:
        row = pos - (kblk.astype(np.int64)[jt] * kb)[:, None]
        col = np.broadcast_to((n % tn)[:, None], pos.shape)
        jjj = np.broadcast_to(jt[:, None], pos.shape)
        np.add.at(Wb, (jjj[valid], row[valid], col[valid]),
                  wvals[valid].astype(np.float32))
    Wb = Wb.reshape(num_j * 2 * kb, tn)

    # keep the (small, banded) weights + block table resident on device
    wb_dev = jnp.asarray(Wb)                    # f32; bf16 possible on v6e/v7x
    kblk_dev = jnp.asarray(kblk, dtype=jnp.int32)
    return wb_dev, kblk_dev, tot_out, tm, tn, kb, num_j, Mp, Kp


def resample(waveform_ncw, orig_freq, new_freq, lowpass_filter_width=6):
    """waveform_ncw: [B, C, T] float32 -> [B, C, T_out] float32."""
    if orig_freq == new_freq:
        return waveform_ncw
    B, C, T = waveform_ncw.shape
    M = B * C
    (wb, kblk, tot_out, tm, tn, kb, num_j, Mp, Kp) = _band_plan(
        int(orig_freq), int(new_freq), int(lowpass_filter_width), int(T), int(M))
    if tot_out == 0:
        return jnp.zeros((B, C, 0), jnp.float32)

    x2d = waveform_ncw.reshape(M, T).astype(jnp.float32)
    Tc = min(T, Kp)                    # samples beyond Kp are provably unused
    xp = jnp.zeros((Mp, Kp), jnp.float32).at[:M, :Tc].set(x2d[:, :Tc])

    y = pallas_banded_resample(xp, wb, kblk, tm=tm, tn=tn, kb=kb, num_j=num_j)
    return y[:M, :tot_out].reshape(B, C, tot_out)


def speed_perturb(waveform, orig_freq, speeds=(90, 95, 105, 110),
                  perturb_prob=1.0, key=None):
    """JAX equivalent of SpeedPerturb.forward.

    waveform: [time] or [time, channels] -> resampled [time'] / [time', ch].
    """
    if key is None:
        key = jax.random.PRNGKey(0)
    k_prob, k_idx = jax.random.split(key)
    # TODO(synk): randomness is resolved eagerly on the host (output length
    # depends on the drawn speed, so the choice cannot live inside jit); pass a
    # fresh `key` each call to mirror the PyTorch module's per-call draws.
    if float(jax.random.uniform(k_prob, ())) > perturb_prob:
        return jnp.asarray(waveform)
    samp_index = int(jax.random.randint(k_idx, (), 0, len(speeds)))
    new_freq = orig_freq * int(speeds[samp_index]) // 100

    wf = jnp.asarray(waveform, jnp.float32)
    if wf.ndim == 2:          # [time, channels] -> [1, time, channels]
        x = wf[None, ...]
    elif wf.ndim == 1:        # [time] -> [1, time, 1]
        x = wf[None, :, None]
    else:
        raise ValueError("Input must be 1 or 2 dimensions")

    x = jnp.transpose(x, (0, 2, 1))            # [B, C, T]  (NCW)
    y = resample(x, orig_freq, new_freq)       # [B, C, T_out]
    y = jnp.transpose(y, (0, 2, 1))            # [B, T_out, C]
    return jnp.squeeze(y)                      # matches torch .squeeze()


# ----------------------------------------------------------------------------
# Dense reference matrix (test-only, O(T^2); never used by the kernel path).
# ----------------------------------------------------------------------------
def _dense_reference_matrix(orig_freq, new_freq, lowpass_filter_width, wave_len):
    base_freq = math.gcd(orig_freq, new_freq)
    conv_stride = orig_freq // base_freq
    P = new_freq // base_freq
    first_indices, weights = _indices_and_weights(
        orig_freq, new_freq, lowpass_filter_width)
    W = weights.shape[1]
    tot_out = _output_samples(wave_len, orig_freq, new_freq)
    o = np.arange(tot_out)
    pos = (first_indices[o % P] + (o // P) * conv_stride)[:, None] \
        + np.arange(W)[None, :]
    w = weights[o % P].astype(np.float64)
    valid = (pos >= 0) & (pos < wave_len)
    R = np.zeros((tot_out, wave_len), dtype=np.float64)
    rows = np.broadcast_to(o[:, None], pos.shape)
    np.add.at(R, (rows[valid], pos[valid]), w[valid])
    return R


if __name__ == "__main__":
    key = jax.random.PRNGKey(0)
    k_data, k_pert = jax.random.split(key)
    # small example: time=512 samples, 4 channels, 16 kHz
    waveform = jax.random.normal(k_data, (512, 4), dtype=jnp.float32)

    # correctness spot-check of the banded Pallas path vs a dense NumPy ref
    x_ncw = jnp.transpose(waveform, (1, 0))[None]            # [1, 4, 512]
    for speed in (90, 110):
        new_freq = 16000 * speed // 100
        y = jax.block_until_ready(resample(x_ncw, 16000, new_freq))
        R = _dense_reference_matrix(16000, new_freq, 6, 512)
        y_ref = np.asarray(x_ncw, np.float64).reshape(4, 512) @ R.T
        got = np.asarray(y).reshape(y_ref.shape)
        err = np.max(np.abs(got - y_ref)) / (np.max(np.abs(y_ref)) + 1e-9)
        assert err < 5e-2, f"speed {speed}: rel err {err:.3e}"

    # module-level forward (SpeedPerturb)
    out = speed_perturb(waveform, orig_freq=16000,
                        speeds=(90, 95, 105, 110), perturb_prob=1.0,
                        key=k_pert)
    jax.block_until_ready(out)
    print("KERNEL_OK")
</pallas_src>

<mosaic_0001>
module attributes {stable_mosaic.version = 11 : i64} {
  func.func @_banded_resample_kernel(%arg0: i32, %arg1: i32, %arg2: i32, %arg3: memref<2xi32, #tpu.memory_space<smem>>, %arg4: memref<8x384xf32, #tpu.memory_space<vmem>>, %arg5: memref<384x256xf32, #tpu.memory_space<vmem>>, %arg6: memref<8x256xf32, #tpu.memory_space<vmem>>) attributes {dimension_semantics = [#tpu.dimension_semantics<parallel>, #tpu.dimension_semantics<parallel>, #tpu.dimension_semantics<arbitrary>], iteration_bounds = array<i64: 1, 2, 2>, scalar_prefetch = 1 : i64, scratch_operands = 0 : i64, tpu.core_type = #tpu.core_type<tc>, window_params = [{transform_indices = @transform_0, window_bounds = array<i64: 8, 384>}, {transform_indices = @transform_1, window_bounds = array<i64: 384, 256>}, {transform_indices = @transform_2, window_bounds = array<i64: 8, 256>}]} {
    %c0_i32 = arith.constant 0 : i32
    %0 = arith.cmpi eq, %arg2, %c0_i32 : i32
    %1 = arith.extui %0 : i1 to i32
    %c0_i32_0 = arith.constant 0 : i32
    %2 = arith.cmpi ne, %1, %c0_i32_0 : i32
    scf.if %2 {
      %cst_8 = arith.constant 0.000000e+00 : f32
      %9 = vector.broadcast %cst_8 : f32 to vector<8x256xf32>
      %c0_9 = arith.constant 0 : index
      %c0_10 = arith.constant 0 : index
      %10 = vector.load %arg6[%c0_9, %c0_10] : memref<8x256xf32, #tpu.memory_space<vmem>>, vector<8x256xf32>
      tpu.vector_store %arg6[%c0_9, %c0_10], %9 {strides = array<i32>} : memref<8x256xf32, #tpu.memory_space<vmem>>, vector<8x256xf32>,
    } else {
    }
    %c0 = arith.constant 0 : index
    %c0_1 = arith.constant 0 : index
    %3 = vector.load %arg6[%c0, %c0_1] : memref<8x256xf32, #tpu.memory_space<vmem>>, vector<8x256xf32>
    %c0_2 = arith.constant 0 : index
    %c0_3 = arith.constant 0 : index
    %4 = vector.load %arg4[%c0_2, %c0_3] : memref<8x384xf32, #tpu.memory_space<vmem>>, vector<8x384xf32>
    %c0_4 = arith.constant 0 : index
    %c0_5 = arith.constant 0 : index
    %5 = vector.load %arg5[%c0_4, %c0_5] : memref<384x256xf32, #tpu.memory_space<vmem>>, vector<384x256xf32>
    %cst = arith.constant dense<0.000000e+00> : vector<8x256xf32>
    %6 = tpu.matmul %4, %5, %cst {dimension_numbers = #tpu.dot_dimension_numbers<[1], [0], [0], [1], [0, 0, 1, 1], [], []>} : vector<8x384xf32>, vector<384x256xf32>, vector<8x256xf32> -> vector<8x256xf32>
    %7 = arith.addf %3, %6 : vector<8x256xf32>
    %c0_6 = arith.constant 0 : index
    %c0_7 = arith.constant 0 : index
    %8 = vector.load %arg6[%c0_6, %c0_7] : memref<8x256xf32, #tpu.memory_space<vmem>>, vector<8x256xf32>
    tpu.vector_store %arg6[%c0_6, %c0_7], %7 {strides = array<i32>} : memref<8x256xf32, #tpu.memory_space<vmem>>, vector<8x256xf32>,
    return
  }
  func.func @transform_0(%arg0: i32, %arg1: i32, %arg2: i32, %arg3: memref<2xi32, #tpu.memory_space<smem>>) -> (i32, i32) {
    %0 = arith.index_cast %arg1 : i32 to index
    %1 = memref.load %arg3[%0] : memref<2xi32, #tpu.memory_space<smem>>
    %2 = arith.addi %1, %arg2 : i32
    %c0_i32 = arith.constant 0 : i32
    return %arg0, %2 : i32, i32
  }
  func.func @transform_1(%arg0: i32, %arg1: i32, %arg2: i32, %arg3: memref<2xi32, #tpu.memory_space<smem>>) -> (i32, i32) {
    %c2_i32 = arith.constant 2 : i32
    %0 = arith.muli %arg1, %c2_i32 : i32
    %1 = arith.addi %0, %arg2 : i32
    %c0_i32 = arith.constant 0 : i32
    %c0_i32_0 = arith.constant 0 : i32
    return %1, %c0_i32 : i32, i32
  }
  func.func @transform_2(%arg0: i32, %arg1: i32, %arg2: i32, %arg3: memref<2xi32, #tpu.memory_space<smem>>) -> (i32, i32) {
    %c0_i32 = arith.constant 0 : i32
    return %arg0, %arg1 : i32, i32
  }
}

</mosaic_0001>

<bundles_post_ra>
// kernel: tpu_custom_call.1
= control target key start
LH: loop header
LB: loop body
LE: loop exit
PB: predicated region body
PF: predicated region fallthrough
CT: control target
= control target key end

     0   :  { %s1019_s12 = smov [#allocation3]   ;;  %s1464_s0 = inlined_call_operand.hbm [shape: s32[2], index: 0, kind: input, shape index: {}]   ;;  %s1465_s1 = inlined_call_operand.hbm [shape: f32[8,768], index: 1, kind: input, shape index: {}]   ;;  %s1466_s2 = inlined_call_operand.hbm [shape: f32[1536,256], index: 2, kind: input, shape index: {}]   ;;  %s1467_s3 = inlined_call_operand.hbm [shape: f32[8,512], index: 3, kind: output, shape index: {}]  }
   0x1   :  { %1484 = sst [smem:[#allocation27_spill]] %s1467_s3 }
   0x2   :  { %9 = dma.hbm_to_smem %s1464_s0, 16, %s1019_s12, [#allocation2] }
   0x3   :  { %949 = dma.done.wait [#allocation2], 16 }
   0x4   :  { %950 = vsyncadd [#allocation2], 4294967280 }
   0x5   :  { %11 = sfence }
   0x6   :  { %12 = vsyncpa [#allocation5], 0 }
   0x7   :  { %14 = vsyncpa [#allocation5 + $0x1], 0 }
   0x8   :  { %15 = vsyncpa [#allocation8], 0 }
   0x9   :  { %17 = vsyncpa [#allocation8 + $0x1], 0 }
   0xa   :  { %18 = vsyncpa [#allocation6], 0 }
   0xb   :  { %20 = vsyncpa [#allocation6 + $0x1], 0  ;;  %s1050_s15 = smov 0   ;;  %s1052_s16 = smov 0  }
   0xc   :  { %s1054_s17 = smov 0   ;;  %s1056_s18 = smov 0  }
   0xd   :  { %s1058_s19 = smov 0   ;;  %s1060_s0 = smov 0  }
   0xe   :  { %s1062_s20 = smov 0   ;;  %s1064_s21 = smov 0  }
   0xf   :  { %s1066_s22 = smov 0   ;;  %s1068_s23 = smov 0  }
  0x10   :  { %s1070_s24 = smov 0   ;;  %s1072_s25 = smov 0  }
  0x11   :  { %s1074_s26 = smov 0   ;;  %s1076_s27 = smov 0  }
  0x12 LB: > { %1485 = sst [smem:[#allocation16_spill]] %s965_s15  ;;  %s636_s28 = sadd.s32 4294967295, %s1017_s27   ;;  %s1017_s27 = sphi %s1076_s27, %s26_s27   ;;  %s1013_s26 = sphi %s1074_s26, %s1538_s26   ;;  %s1009_s25 = sphi %s1072_s25, %s1537_s25   ;;  %s1005_s24 = sphi %s1070_s24, %s1536_s24   ;;  %s1001_s23 = sphi %s1068_s23, %s1535_s23   ;;  %s997_s22 = sphi %s1066_s22, %s1529_s22   ;;  %s993_s21 = sphi %s1064_s21, %s1534_s21   ;;  %s989_s20 = sphi %s1062_s20, %s1533_s20   ;;  %s985_s0 = sphi %s1060_s0, %s1532_s0   ;;  %s981_s19 = sphi %s1058_s19, %s1531_s19   ;;  %s977_s18 = sphi %s1056_s18, %s1530_s18   ;;  %s973_s17 = sphi %s1054_s17, %s1527_s17   ;;  %s969_s16 = sphi %s1052_s16, %s1526_s16   ;;  %s965_s15 = sphi %s1050_s15, %s1525_s15  }
  0x13   : > { %1486 = sst [smem:[#allocation17_spill]] %s969_s16  ;;  %s637_s29 = sadd.s32 4294967294, %s1017_s27  }
  0x14   : > { %1487 = sst [smem:[#allocation18_spill]] %s973_s17  ;;  %s38_s30 = sadd.s32 1, %s1009_s25 }
  0x15   : > { %1488 = sst [smem:[#allocation19_spill]] %s997_s22  ;;  %s41_s4 = sadd.s32 1, %s1013_s26 }
  0x16   : > { %1489 = sst [smem:[#allocation20_spill]] %s1001_s23  ;;  %p39_p0 = scmp.ge.s32.totalorder %s38_s30, 2 }
  0x17   : > { %1490 = sst [smem:[#allocation21_spill]] %s1005_s24  ;;  %p65_p1 = scmp.ne.s32.totalorder %s997_s22, %s993_s21 }
  0x18   : > { %s49_s5 = sld [smem:[#allocation3 + %s1013_s26]]  ;;  %s1540_s30 = smov (%p39_p0, %s38_s30), 0 }
  0x19   : > { %s1542_s4 = smov (!%p39_p0, %s41_s4), %s1013_s26  ;;  %p1480_p2 = scmp.eq.s32.totalorder %s1017_s27, 0 }
  0x1a   : > { %p71_p3 = scmp.ne.s32.totalorder %s993_s21, %s989_s20  ;;  %p43_p4 = scmp.ge.s32.totalorder %s1542_s4, 2 }
  0x1b   : > { %p1131_p5 = scmp.eq.s32.totalorder %s636_s28, 0  ;;  %p1138_p6 = por %p1480_p2, %p65_p1 }
  0x1c   : > { %s1544_s4 = smov (%p43_p4, %s1542_s4), 0  ;;  %s116_s11 = sadd.s32 1, %s973_s17 }
  0x1d   : > { %s1491_s7 = scalar_select %p1131_p5, 1, 0 }
  0x1e   : > { %s50_s8 = sadd.s32 %s1009_s25, %s49_s5  ;;  %p1146_p7 = por %p1131_p5, %p71_p3 }
  0x1f   : > { %s51_s12 = sld [smem:[#allocation3 + %s1544_s4]]  ;;  %s112_s13 = ssub.s32 %s1013_s26, %s1544_s4 }
  0x20   : > { %s1493_s10 = scalar_select %p1146_p7, 1, 0 }
  0x21   : > { %p114_p8 = scmp.eq.s32.totalorder %s112_s13, 0  ;;  %p126_p9 = scmp.ne.s32.totalorder %s973_s17, %s969_s16 }
  0x22   : > { %1494 = sst [smem:[#allocation22_spill]] %s1493_s10  ;;  %p127_p10 = scmp.eq.s32.totalorder %s636_s28, 3 }
  0x23   : > { %p132_p11 = scmp.ne.s32.totalorder %s969_s16, %s965_s15  ;;  %p133_p13 = scmp.eq.s32.totalorder %s637_s29, 3 }
  0x24   : > { %s1159_s14 = scalar_select %p114_p8, %s973_s17, %s116_s11  }
  0x25   : > { %p1161_p12 = por %p127_p10, %p126_p9  ;;  %p1479_p0 = scmp.lt.s32.totalorder %s1017_s27, 4 }
  0x26   : > { %1495 = sst [smem:[#allocation23_spill]] %s1159_s14  ;;  %s52_s5 = sadd.s32 %s51_s12, %s1540_s30 }
  0x27   : > { %s1496_s20 = scalar_select %p1161_p12, 1, 0 }
  0x28   : > { %p1167_p1 = por %p133_p13, %p132_p11  ;;  %s54_s6 = ssub.s32 %s50_s8, %s52_s5 }
  0x29   : > { %1497 = sst [smem:[#allocation24_spill]] %s1496_s20  ;;  %s153_s28 = sand.u32 1, %s997_s22  }
  0x2a   : > { %s1498_s13 = scalar_select %p1167_p1, 1, 0 }
  0x2b   : > { %p56_p3 = scmp.eq.s32.totalorder %s54_s6, 0  ;;  %s659_s11 = smul.u32 24, %s153_s28 }
  0x2c   : > { %1499 = sst [smem:[#allocation25_spill]] %s1498_s13  ;;  %p1176_p4 = pnand %p1479_p0, %p1138_p6 }
  0x2d   : > { %s1501_s29 = sadd.s32 1, %s997_s22  ;;  %s157_s6 = scalar_lea.vmem [#allocation4], %s659_s11 }
  0x2e   : > { %s1183_s12 = scalar_select %p56_p3, %s997_s22, %s1501_s29  }
  0x2f   : > { %s663_s17 = scalar_select %p1138_p6, [#allocation3], [#allocation10] }
  0x30   : > { %1502 = sst [smem:[#allocation26_spill]] %s1183_s12  ;;  %s169_s5 = sshll.u32 %s157_s6, 4  ;;  %s1195_s5 = int_to_ptr.vmem [resolvable:$true] %s169_s5 }
  0x31   : > { %s664_s8 = scalar_select %p1138_p6, %s1013_s26, 0 }
  0x32   : > { %s1546_s17 = smov (!%p1479_p0, %s663_s17), [#allocation11]  ;;  %p646_p8 = scmp.ge.s32.totalorder %s1017_s27, 1 }
  0x33   : > { %s1548_s8 = smov (!%p1479_p0, %s664_s8), 0  ;;  %p198_p9 = scmp.lt.s32.totalorder %s1017_s27, 5 }
  0x34   : > { %s158_s13 = sld [smem:[%s1546_s17 + %s1548_s8]]  ;;  %s638_s9 = sshll.u32 %s1013_s26, 1 }
  0x35   : > { %p1198_p10 = pnand %p646_p8, %p198_p9  ;;  %s639_s12 = sshll.u32 %s1544_s4, 1 }
  0x36   : > { %s1206_s15 = sadd.s32 %s1009_s25, %s638_s9  ;;  %s84_s20 = sadd.s32 %s639_s12, %s1540_s30 }
  0x37   : > { %s1503_s29 = scalar_select %p1198_p10, 1, 0 }
  0x38   : > { %s85_s11 = ssub.s32 %s1206_s15, %s84_s20  ;;  %s88_s6 = sadd.s32 1, %s985_s0 }
  0x39   : > { %p1214_p6 = scmp.eq.s32.totalorder %s85_s11, 0  ;;  %s154_s16 = scalar_lea.sflag [#allocation5], %s153_s28 }
  0x3a   : > { %s159_s22 = sadd.s32 %s1009_s25, %s158_s13  ;;  %p813_p13 = pneg %p1176_p4 }
  0x3b   : > { %s654_s3 = smul.u32 384, %s159_s22  ;;  %s816_s20 = scalar_lea.hbm %s1465_s1, 768 }
  0x3c   : > { %s1504_s23 = scalar_select %p1214_p6, 1, 0 }
  0x3d   : > { %s167_s8 = scalar_lea.hbm %s1465_s1, %s654_s3 }
  0x3e   : > { %s811_s10 = scalar_lea.hbm %s167_s8, 384  ;;  %p817_p9 = scmp.lt.s32.totalorder %s167_s8, %s1465_s1 }
  0x3f   : > { %p812_p11 = scmp.ne.s32.totalorder %s167_s8, %s811_s10  ;;  %p818_p0 = scmp.lt.s32.totalorder %s816_s20, %s811_s10 }
  0x41   : > { %p814_p3 = pnand %p813_p13, %p812_p11  ;;  %p819_p2 = por %p818_p0, %p817_p9 }
  0x43   : > { %p815_p8 = pneg %p814_p3 }
  0x45   : > { %p820_p1 = pnand %p819_p2, %p815_p8 }
  0x47   : > { %823 = shalt.err (!%p820_p1)
}
  0x48   : > { %s824_s3 = scalar_lea.vmem %s1195_s5, 384  ;;  %s1020_s24 = smov [#allocation4]  }
  0x49   : > { %p825_p12 = scmp.ne.s32.totalorder %s1195_s5, %s824_s3  ;;  %s829_s28 = sshll.u32 %s1020_s24, 4  ;;  %s830_s28 = int_to_ptr.vmem [resolvable:$false] %s829_s28 }
  0x4a   : > { %s831_s11 = scalar_lea.vmem %s830_s28, 768  ;;  %p832_p3 = scmp.lt.s32.totalorder %s1195_s5, %s830_s28 }
  0x4b   : > { %p827_p7 = pnand %p825_p12, %p813_p13  ;;  %p833_p10 = scmp.lt.s32.totalorder %s831_s11, %s824_s3 }
  0x4d   : > { %p828_p11 = pneg %p827_p7  ;;  %p834_p5 = por %p833_p10, %p832_p3 }
  0x4f   : > { %p835_p6 = pnand %p834_p5, %p828_p11 }
  0x51   : > { %838 = shalt.err (!%p835_p6)
}
  0x52   : > { %676 = dma.hbm_to_vmem [thread:$0]  (!%p1176_p4), %s167_s8, 384, %s1195_s5, %s154_s16  }
  0x53   : > { %p1505_p2 = scmp.ne.s32.totalorder %s1504_s23, 0  ;;  %p95_p5 = scmp.ne.s32.totalorder %s985_s0, %s981_s19 }
  0x54   : > { %p101_p7 = scmp.ne.s32.totalorder %s981_s19, %s977_s18  ;;  %s176_s14 = sand.u32 1, %s985_s0  }
  0x55   : > { %s1237_s10 = scalar_select %p1505_p2, %s985_s0, %s88_s6  }
  0x56   : > { %s658_s17 = smul.u32 12288, %s1206_s15  ;;  %p1506_p12 = scmp.eq.s32.totalorder %s1017_s27, 0 }
  0x57   : > { %p1507_p1 = scmp.ne.s32.totalorder %s1491_s7, 0  ;;  %s660_s22 = smul.u32 768, %s176_s14 }
  0x58   : > { %p97_p0 = por %p95_p5, %p1506_p12  ;;  %s189_s16 = scalar_lea.hbm %s1466_s2, %s658_s17 }
  0x59   : > { %p1249_p10 = por %p101_p7, %p1507_p1  ;;  %p1509_p4 = scmp.lt.s32.totalorder %s1017_s27, 4 }
  0x5a   : > { %s180_s18 = scalar_lea.vmem [#allocation7], %s660_s22  ;;  %s177_s5 = scalar_lea.sflag [#allocation8], %s176_s14 }
  0x5b   : > { %p1258_p6 = pnand %p1509_p4, %p97_p0  ;;  %s190_s15 = sshll.u32 %s180_s18, 4  ;;  %s191_s15 = int_to_ptr.vmem [resolvable:$true] %s190_s15 }
  0x5c   : > { %s852_s7 = scalar_lea.vmem %s191_s15, 12288  ;;  %s1021_s6 = smov [#allocation7]  }
  0x5d   : > { %p841_p13 = pneg %p1258_p6  ;;  %p853_p8 = scmp.ne.s32.totalorder %s191_s15, %s852_s7 }
  0x5e   : > { %s857_s8 = sshll.u32 %s1021_s6, 4  ;;  %s858_s8 = int_to_ptr.vmem [resolvable:$false] %s857_s8 }
  0x5f   : > { %p855_p9 = pnand %p853_p8, %p841_p13  ;;  %s859_s9 = scalar_lea.vmem %s858_s8, 24576 }
  0x60   : > { %p860_p3 = scmp.lt.s32.totalorder %s191_s15, %s858_s8  ;;  %p861_p2 = scmp.lt.s32.totalorder %s859_s9, %s852_s7 }
  0x61   : > { %p856_p11 = pneg %p855_p9 }
  0x62   : > { %p862_p5 = por %p861_p2, %p860_p3 }
  0x64   : > { %p863_p7 = pnand %p862_p5, %p856_p11 }
  0x66   : > { %866 = shalt.err (!%p863_p7)
}
  0x67   : > { %s1022_s3 = smov 256   ;;  %s1023_s24 = smov 16  }
  0x68   : > { %679 = dma.hbm_to_vmem [thread:$0]  (!%p1258_p6), %s189_s16, 12288, %s191_s15, %s177_s5, %s1022_s3, %s1022_s3, %s1023_s24  }
  0x69   : > { %p1511_p12 = scmp.ne.s32.totalorder %s1503_s29, 0 }
  0x6a   : > { %s1512_s28 = sld [smem:[#allocation22_spill]] (!%p1511_p12)  ;;  %s204_s11 = sand.u32 (!%p1511_p12), 1, %s993_s21  }
  0x6b   : > { %202 = sbr.rel (%p1511_p12) target bundleno = 413 (0x19d), region = 28  ;;  %s205_s17 = scalar_lea.sflag (!%p1511_p12), [#allocation5], %s204_s11 }
  0x6c   : > { %s661_s14 = smul.u32 (!%p1511_p12), 24, %s204_s11 }
  0x6e   : > { %s1269_s22 = scalar_lea.vmem (!%p1511_p12), [#allocation4], %s661_s14 }
  0x70   : > { %p1513_p0 = scmp.ne.s32.totalorder %s1512_s28, 0 }
  0x72   : > { %952 = dma.done.wait (%p1513_p0), %s205_s17, 384  }
  0x73   : > { %954 = vsyncadd (%p1513_p0), %s205_s17, 4294966912  ;;  %s213_s20 = sand.u32 1, %s981_s19  }
  0x74   : > { %s662_s12 = smul.u32 768, %s213_s20  ;;  %s214_s16 = scalar_lea.sflag [#allocation8], %s213_s20 }
  0x76   : > { %s1276_s23 = scalar_lea.vmem [#allocation7], %s662_s12 }
  0x77   : > { %956 = dma.done.wait (%p1249_p10), %s214_s16, 12288  }
  0x78   : > { %958 = vsyncadd (%p1249_p10), %s214_s16, 4294955008  ;;  %s1514_s29 = sld [smem:[#allocation17_spill]] }
  0x79   : > { %s1515_s7 = sld [smem:[#allocation20_spill]] }
  0x7e   : > { %s240_s18 = sand.u32 1, %s1514_s29  }
  0x7f   : > { %s647_s15 = sshll.u32 %s240_s18, 4  ;;  %p648_p1 = scmp.ne.s32.totalorder %s1515_s7, 0 }
  0x80   : > { %s1285_s5 = scalar_lea.vmem [#allocation9], %s647_s15 }
  0x81   : > { %253 = sbr.rel (%p648_p1) target bundleno = 136 (0x88), region = 40 }
  0x86   : > { %v1024_v0 = vmov 0.0  }
  0x87   : > { %254 = vst [vmem:[%s1285_s5] sm:$0xff] %v1024_v0  ;;  %255 = vst [vmem:[%s1285_s5 + $0x8] sm:$0xff] %v1024_v0 }
  0x88 PF: > { %v292_v1 = vld [vmem:[%s1276_s23 + $0xf8] sm:$0xff]  ;;  %v291_v2 = vld [vmem:[%s1276_s23 + $0xf0] sm:$0xff]  ;;  %v290_v3 = vld [vmem:[%s1276_s23 + $0xe8] sm:$0xff]  ;;  %v1025_v5 = vmov 0.0   ;;  %s1516_s13 = sld [smem:[#allocation21_spill]]  ;;  %s520_s3 = sshll.u32 %s1285_s5, 4  ;;  %s521_s3 = int_to_ptr.vmem [resolvable:$true] %s520_s3 }
  0x89   : > { %357 = vmatprep.subr.mxu0 %v292_v1  ;;  %v289_v4 = vld [vmem:[%s1276_s23 + $0xe0] sm:$0xff]  ;;  %492 = vmatprep.mubr.f32.mxu1 %v1025_v5  ;;  %v288_v6 = vld [vmem:[%s1276_s23 + $0xd8] sm:$0xff]  ;;  %v287_v7 = vld [vmem:[%s1276_s23 + $0xd0] sm:$0xff]  ;;  %s1518_s8 = sld [smem:[#allocation24_spill]]  ;;  %s504_s17 = scalar_lea.sflag [#allocation6], %s240_s18 }
  0x8a   : > { %358 = vmatpush1.msra.mxu0 %v291_v2  ;;  %v286_v8 = vld [vmem:[%s1276_s23 + $0xc8] sm:$0xff]  ;;  %v285_v9 = vld [vmem:[%s1276_s23 + $0xc0] sm:$0xff]  ;;  %v284_v10 = vld [vmem:[%s1276_s23 + $0xb8] sm:$0xff]  ;;  %s1519_s11 = sld [smem:[#allocation27_spill]]  ;;  %s1026_s20 = smov [#allocation9]  }
  0x8b   : > { %359 = vmatprep.subr.mxu0 %v290_v3  ;;  %v283_v11 = vld [vmem:[%s1276_s23 + $0xb0] sm:$0xff]  ;;  %v282_v12 = vld [vmem:[%s1276_s23 + $0xa8] sm:$0xff]  ;;  %v281_v13 = vld [vmem:[%s1276_s23 + $0xa0] sm:$0xff]  ;;  %s871_s12 = sshll.u32 %s1026_s20, 4  ;;  %s872_s12 = int_to_ptr.vmem [resolvable:$false] %s871_s12 }
  0x8c   : > { %360 = vmatpush1.msra.mxu0 %v289_v4  ;;  %v280_v14 = vld [vmem:[%s1276_s23 + $0x98] sm:$0xff]  ;;  %v279_v16 = vld [vmem:[%s1276_s23 + $0x90] sm:$0xff]  ;;  %v354_v18 = vld [vmem:[%s1276_s23 + $0x2e8] sm:$0xff]  ;;  %s873_s16 = scalar_lea.vmem %s872_s12, 512  ;;  %p874_p8 = scmp.lt.s32.totalorder %s521_s3, %s872_s12 }
  0x8d   : > { %361 = vmatprep.subr.mxu0 %v288_v6  ;;  %v356_v15 = vld [vmem:[%s1276_s23 + $0x2f8] sm:$0xff]  ;;  %v355_v17 = vld [vmem:[%s1276_s23 + $0x2f0] sm:$0xff]  ;;  %v278_v19 = vld [vmem:[%s1276_s23 + $0x88] sm:$0xff] }
  0x8e   : > { %362 = vmatpush1.msra.mxu0 %v287_v7  ;;  %428 = vmatprep.subr.mxu1 %v356_v15  ;;  %v353_v20 = vld [vmem:[%s1276_s23 + $0x2e0] sm:$0xff]  ;;  %v352_v22 = vld [vmem:[%s1276_s23 + $0x2d8] sm:$0xff]  ;;  %v351_v23 = vld [vmem:[%s1276_s23 + $0x2d0] sm:$0xff]  ;;  %s657_s9 = sshll.u32 %s1516_s13, 8 }
  0x8f   : > { %363 = vmatprep.subr.mxu0 %v286_v8  ;;  %429 = vmatpush1.msra.mxu1 %v355_v17  ;;  %v277_v21 = vld [vmem:[%s1276_s23 + $0x80] sm:$0xff]  ;;  %v276_v24 = vld [vmem:[%s1276_s23 + $0x78] sm:$0xff]  ;;  %v350_v25 = vld [vmem:[%s1276_s23 + $0x2c8] sm:$0xff]  ;;  %p1520_p4 = scmp.ne.s32.totalorder %s1518_s8, 0 }
  0x90   : > { %364 = vmatpush1.msra.mxu0 %v285_v9  ;;  %430 = vmatprep.subr.mxu1 %v354_v18  ;;  %v275_v26 = vld [vmem:[%s1276_s23 + $0x70] sm:$0xff]  ;;  %v349_v27 = vld [vmem:[%s1276_s23 + $0x2c0] sm:$0xff]  ;;  %v274_v28 = vld [vmem:[%s1276_s23 + $0x68] sm:$0xff]  ;;  %s518_s14 = scalar_lea.hbm %s1519_s11, %s657_s9 }
  0x91   : > { %365 = vmatprep.subr.mxu0 %v284_v10  ;;  %431 = vmatpush1.msra.mxu1 %v353_v20  ;;  %v348_v29 = vld [vmem:[%s1276_s23 + $0x2b8] sm:$0xff]  ;;  %v273_v30 = vld [vmem:[%s1276_s23 + $0x60] sm:$0xff]  ;;  %v347_v31 = vld [vmem:[%s1276_s23 + $0x2b0] sm:$0xff] }
  0x92   : > { %366 = vmatpush1.msra.mxu0 %v283_v11  ;;  %432 = vmatprep.subr.mxu1 %v352_v22  ;;  %v272_v32 = vld [vmem:[%s1276_s23 + $0x58] sm:$0xff]  ;;  %v346_v33 = vld [vmem:[%s1276_s23 + $0x2a8] sm:$0xff]  ;;  %v271_v34 = vld [vmem:[%s1276_s23 + $0x50] sm:$0xff] }
  0x93   : > { %367 = vmatprep.subr.mxu0 %v282_v12  ;;  %433 = vmatpush1.msra.mxu1 %v351_v23  ;;  %v345_v35 = vld [vmem:[%s1276_s23 + $0x2a0] sm:$0xff]  ;;  %v270_v36 = vld [vmem:[%s1276_s23 + $0x48] sm:$0xff]  ;;  %v344_v37 = vld [vmem:[%s1276_s23 + $0x298] sm:$0xff] }
  0x94   : > { %368 = vmatpush1.msra.mxu0 %v281_v13  ;;  %434 = vmatprep.subr.mxu1 %v350_v25  ;;  %v269_v38 = vld [vmem:[%s1276_s23 + $0x40] sm:$0xff]  ;;  %v343_v39 = vld [vmem:[%s1276_s23 + $0x290] sm:$0xff]  ;;  %v268_v40 = vld [vmem:[%s1276_s23 + $0x38] sm:$0xff] }
  0x95   : > { %369 = vmatprep.subr.mxu0 %v280_v14  ;;  %435 = vmatpush1.msra.mxu1 %v349_v27  ;;  %v342_v41 = vld [vmem:[%s1276_s23 + $0x288] sm:$0xff]  ;;  %v267_v42 = vld [vmem:[%s1276_s23 + $0x30] sm:$0xff]  ;;  %v341_v43 = vld [vmem:[%s1276_s23 + $0x280] sm:$0xff] }
  0x96   : > { %370 = vmatpush1.msra.mxu0 %v279_v16  ;;  %436 = vmatprep.subr.mxu1 %v348_v29  ;;  %v266_v44 = vld [vmem:[%s1276_s23 + $0x28] sm:$0xff]  ;;  %v340_v45 = vld [vmem:[%s1276_s23 + $0x278] sm:$0xff]  ;;  %v265_v46 = vld [vmem:[%s1276_s23 + $0x20] sm:$0xff] }
  0x97   : > { %371 = vmatprep.subr.mxu0 %v278_v19  ;;  %437 = vmatpush1.msra.mxu1 %v347_v31  ;;  %v339_v47 = vld [vmem:[%s1276_s23 + $0x270] sm:$0xff]  ;;  %v264_v48 = vld [vmem:[%s1276_s23 + $0x18] sm:$0xff]  ;;  %v338_v49 = vld [vmem:[%s1276_s23 + $0x268] sm:$0xff] }
  0x98   : > { %372 = vmatpush1.msra.mxu0 %v277_v21  ;;  %438 = vmatprep.subr.mxu1 %v346_v33  ;;  %v263_v50 = vld [vmem:[%s1276_s23 + $0x10] sm:$0xff]  ;;  %v337_v51 = vld [vmem:[%s1276_s23 + $0x260] sm:$0xff]  ;;  %v262_v52 = vld [vmem:[%s1276_s23 + $0x8] sm:$0xff] }
  0x99   : > { %373 = vmatprep.subr.mxu0 %v276_v24  ;;  %439 = vmatpush1.msra.mxu1 %v345_v35  ;;  %v336_v53 = vld [vmem:[%s1276_s23 + $0x258] sm:$0xff]  ;;  %v261_v54 = vld [vmem:[%s1276_s23] sm:$0xff]  ;;  %v335_v55 = vld [vmem:[%s1276_s23 + $0x250] sm:$0xff] }
  0x9a   : > { %374 = vmatpush1.msra.mxu0 %v275_v26  ;;  %440 = vmatprep.subr.mxu1 %v344_v37  ;;  %v324_v56 = vld [vmem:[%s1276_s23 + $0x1f8] sm:$0xff]  ;;  %v334_v57 = vld [vmem:[%s1276_s23 + $0x248] sm:$0xff]  ;;  %v323_v58 = vld [vmem:[%s1276_s23 + $0x1f0] sm:$0xff] }
  0x9b   : > { %375 = vmatprep.subr.mxu0 %v274_v28  ;;  %441 = vmatpush1.msra.mxu1 %v343_v39  ;;  %v333_v59 = vld [vmem:[%s1276_s23 + $0x240] sm:$0xff]  ;;  %v322_v60 = vld [vmem:[%s1276_s23 + $0x1e8] sm:$0xff]  ;;  %v332_v61 = vld [vmem:[%s1276_s23 + $0x238] sm:$0xff] }
  0x9c   : > { %376 = vmatpush1.msra.mxu0 %v273_v30  ;;  %442 = vmatprep.subr.mxu1 %v342_v41  ;;  %v321_v62 = vld [vmem:[%s1276_s23 + $0x1e0] sm:$0xff]  ;;  %v331_v63 = vld [vmem:[%s1276_s23 + $0x230] sm:$0xff]  ;;  %v320_v0 = vld [vmem:[%s1276_s23 + $0x1d8] sm:$0xff] }
  0x9d   : > { %377 = vmatprep.subr.mxu0 %v272_v32  ;;  %443 = vmatpush1.msra.mxu1 %v341_v43  ;;  %v330_v1 = vld [vmem:[%s1276_s23 + $0x228] sm:$0xff]  ;;  %v319_v2 = vld [vmem:[%s1276_s23 + $0x1d0] sm:$0xff]  ;;  %v329_v3 = vld [vmem:[%s1276_s23 + $0x220] sm:$0xff] }
  0x9e   : > { %378 = vmatpush1.msra.mxu0 %v271_v34  ;;  %444 = vmatprep.subr.mxu1 %v340_v45  ;;  %v318_v4 = vld [vmem:[%s1276_s23 + $0x1c8] sm:$0xff]  ;;  %v328_v5 = vld [vmem:[%s1276_s23 + $0x218] sm:$0xff]  ;;  %v317_v6 = vld [vmem:[%s1276_s23 + $0x1c0] sm:$0xff] }
  0x9f   : > { %379 = vmatprep.subr.mxu0 %v270_v36  ;;  %445 = vmatpush1.msra.mxu1 %v339_v47  ;;  %v327_v7 = vld [vmem:[%s1276_s23 + $0x210] sm:$0xff]  ;;  %v316_v8 = vld [vmem:[%s1276_s23 + $0x1b8] sm:$0xff]  ;;  %v326_v9 = vld [vmem:[%s1276_s23 + $0x208] sm:$0xff] }
  0xa0   : > { %380 = vmatpush1.msra.mxu0 %v269_v38  ;;  %446 = vmatprep.subr.mxu1 %v338_v49  ;;  %v315_v10 = vld [vmem:[%s1276_s23 + $0x1b0] sm:$0xff]  ;;  %v325_v11 = vld [vmem:[%s1276_s23 + $0x200] sm:$0xff]  ;;  %v314_v12 = vld [vmem:[%s1276_s23 + $0x1a8] sm:$0xff] }
  0xa1   : > { %381 = vmatprep.subr.mxu0 %v268_v40  ;;  %447 = vmatpush1.msra.mxu1 %v337_v51  ;;  %v260_v13 = vld [vmem:[%s1269_s22 + $0x10] sm:$0xff]  ;;  %v259_v15 = vld [vmem:[%s1269_s22 + $0x8] sm:$0xff]  ;;  %v310_v18 = vld [vmem:[%s1276_s23 + $0x188] sm:$0xff] }
  0xa2   : > { %382 = vmatpush1.msra.mxu0 %v267_v42  ;;  %448 = vmatprep.subr.mxu1 %v336_v53  ;;  %v313_v14 = vld [vmem:[%s1276_s23 + $0x1a0] sm:$0xff]  ;;  %v312_v16 = vld [vmem:[%s1276_s23 + $0x198] sm:$0xff]  ;;  %v311_v17 = vld [vmem:[%s1276_s23 + $0x190] sm:$0xff] }
  0xa3   : > { %383 = vmatprep.subr.mxu0 %v266_v44  ;;  %449 = vmatpush1.msra.mxu1 %v335_v55  ;;  %v309_v19 = vld [vmem:[%s1276_s23 + $0x180] sm:$0xff]  ;;  %v308_v20 = vld [vmem:[%s1276_s23 + $0x178] sm:$0xff]  ;;  %v307_v21 = vld [vmem:[%s1276_s23 + $0x170] sm:$0xff] }
  0xa4   : > { %384 = vmatpush1.msra.mxu0 %v265_v46  ;;  %450 = vmatprep.subr.mxu1 %v334_v57  ;;  %v306_v22 = vld [vmem:[%s1276_s23 + $0x168] sm:$0xff]  ;;  %v305_v23 = vld [vmem:[%s1276_s23 + $0x160] sm:$0xff]  ;;  %v304_v24 = vld [vmem:[%s1276_s23 + $0x158] sm:$0xff] }
  0xa5   : > { %385 = vmatprep.subr.mxu0 %v264_v48  ;;  %451 = vmatpush1.msra.mxu1 %v333_v59  ;;  %v303_v25 = vld [vmem:[%s1276_s23 + $0x150] sm:$0xff]  ;;  %v302_v26 = vld [vmem:[%s1276_s23 + $0x148] sm:$0xff]  ;;  %v301_v27 = vld [vmem:[%s1276_s23 + $0x140] sm:$0xff] }
  0xa6   : > { %386 = vmatpush1.msra.mxu0 %v263_v50  ;;  %452 = vmatprep.subr.mxu1 %v332_v61  ;;  %v300_v28 = vld [vmem:[%s1276_s23 + $0x138] sm:$0xff]  ;;  %v299_v29 = vld [vmem:[%s1276_s23 + $0x130] sm:$0xff]  ;;  %v298_v30 = vld [vmem:[%s1276_s23 + $0x128] sm:$0xff] }
  0xa7   : > { %387 = vmatprep.subr.mxu0 %v262_v52  ;;  %453 = vmatpush1.msra.mxu1 %v331_v63  ;;  %v297_v31 = vld [vmem:[%s1276_s23 + $0x120] sm:$0xff]  ;;  %v296_v32 = vld [vmem:[%s1276_s23 + $0x118] sm:$0xff]  ;;  %v295_v33 = vld [vmem:[%s1276_s23 + $0x110] sm:$0xff] }
  0xa8   : > { %388 = vmatpush1.msra.mxu0 %v261_v54  ;;  %454 = vmatprep.subr.mxu1 %v330_v1  ;;  %v294_v34 = vld [vmem:[%s1276_s23 + $0x108] sm:$0xff]  ;;  %v293_v35 = vld [vmem:[%s1276_s23 + $0x100] sm:$0xff] }
  0xa9   : > { %389 = vmatprep.subr.mxu0 %v324_v56  ;;  %455 = vmatpush1.msra.mxu1 %v329_v3  ;;  %v258_v36 = vld [vmem:[%s1269_s22] sm:$0xff]  ;;  %v256_v38 = vld [vmem:[%s1285_s5] sm:$0xff]  ;;  %v257_v42 = vld [vmem:[%s1285_s5 + $0x8] sm:$0xff]  ;;  %s867_s22 = scalar_lea.vmem %s521_s3, 256 }
  0xaa   : > { %390 = vmatpush2.msra.mxu0 %v323_v58  ;;  %456 = vmatprep.subr.mxu1 %v328_v5  ;;  %p868_p10 = scmp.ne.s32.totalorder %s521_s3, %s867_s22  ;;  %p875_p9 = scmp.lt.s32.totalorder %s873_s16, %s867_s22 }
  0xab   : > { %391 = vmatprep.subr.mxu0 %v322_v60  ;;  %457 = vmatpush1.msra.mxu1 %v327_v7 }
  0xac   : > { %392 = vmatpush2.msra.mxu0 %v321_v62  ;;  %458 = vmatprep.subr.mxu1 %v326_v9  ;;  %p869_p6 = pnand %p868_p10, %p1520_p4  ;;  %p876_p11 = por %p875_p9, %p874_p8 }
  0xad   : > { %393 = vmatprep.subr.mxu0 %v320_v0  ;;  %459 = vmatpush1.msra.mxu1 %v325_v11 }
  0xae   : > { %394 = vmatpush2.msra.mxu0 %v319_v2  ;;  %493 = vmatmul.mubr.f32.vlgmr.msra.gmra.mxu1 %v260_v13  ;;  %p870_p13 = pneg %p869_p6 }
  0xaf   : > { %395 = vmatprep.subr.mxu0 %v318_v4  ;;  %421 = vmatprep.mubr.f32.mxu0 %v259_v15 }
  0xb0   : > { %396 = vmatpush2.msra.mxu0 %v317_v6  ;;  %p877_p3 = pnand %p876_p11, %p870_p13 }
  0xb1   : > { %397 = vmatprep.subr.mxu0 %v316_v8 }
  0xb2   : > { %398 = vmatpush2.msra.mxu0 %v315_v10 }
  0xb3   : > { %399 = vmatprep.subr.mxu0 %v314_v12 }
  0xb4   : > { %400 = vmatpush2.msra.mxu0 %v313_v14 }
  0xb5   : > { %401 = vmatprep.subr.mxu0 %v312_v16 }
  0xb6   : > { %402 = vmatpush2.msra.mxu0 %v311_v17 }
  0xb7   : > { %403 = vmatprep.subr.mxu0 %v310_v18 }
  0xb8   : > { %404 = vmatpush2.msra.mxu0 %v309_v19 }
  0xb9   : > { %405 = vmatprep.subr.mxu0 %v308_v20 }
  0xba   : > { %406 = vmatpush2.msra.mxu0 %v307_v21 }
  0xbb   : > { %407 = vmatprep.subr.mxu0 %v306_v22 }
  0xbc   : > { %408 = vmatpush2.msra.mxu0 %v305_v23 }
  0xbd   : > { %409 = vmatprep.subr.mxu0 %v304_v24 }
  0xbe   : > { %410 = vmatpush2.msra.mxu0 %v303_v25 }
  0xbf   : > { %411 = vmatprep.subr.mxu0 %v302_v26 }
  0xc0   : > { %412 = vmatpush2.msra.mxu0 %v301_v27 }
  0xc1   : > { %413 = vmatprep.subr.mxu0 %v300_v28 }
  0xc2   : > { %414 = vmatpush2.msra.mxu0 %v299_v29 }
  0xc3   : > { %415 = vmatprep.subr.mxu0 %v298_v30 }
  0xc4   : > { %416 = vmatpush2.msra.mxu0 %v297_v31 }
  0xc5   : > { %417 = vmatprep.subr.mxu0 %v296_v32 }
  0xc6   : > { %418 = vmatpush2.msra.mxu0 %v295_v33 }
  0xc7   : > { %419 = vmatprep.subr.mxu0 %v294_v34 }
  0xc8   : > { %420 = vmatpush2.msra.mxu0 %v293_v35 }
  0xc9   : > { %422 = vmatmul.mubr.f32.vlgmr.msra.gmra.mxu0 %v258_v36 }
 0x16e   : > { %v494_v37 = vpop.f32.mrf.mxu1 }
 0x170   : > { %v496_v41 = vpop.f32.mrf.mxu1 }
 0x189   : > { %v423_v39 = vpop.f32.mrf.mxu0 }
 0x18a   : > { %v495_v40 = vadd.f32 %v494_v37, %v423_v39 }
 0x18b   : > { %v425_v43 = vpop.f32.mrf.mxu0 }
 0x18c   : > { %v499_v44 = vadd.f32 %v495_v40, %v256_v38  ;;  %v497_v45 = vadd.f32 %v496_v41, %v425_v43 }
 0x18e   : > { %501 = vst [vmem:[%s1285_s5] sm:$0xff] %v499_v44  ;;  %v500_v46 = vadd.f32 %v497_v45, %v257_v42 }
 0x190   : > { %502 = vst [vmem:[%s1285_s5 + $0x8] sm:$0xff] %v500_v46 }
 0x191   : > { %880 = shalt.err (!%p877_p3)
}
 0x192   : > { %s881_s23 = scalar_lea.hbm %s518_s14, 256  ;;  %s885_s15 = scalar_lea.hbm %s1519_s11, 512 }
 0x193   : > { %p882_p2 = scmp.ne.s32.totalorder %s518_s14, %s881_s23  ;;  %p886_p12 = scmp.lt.s32.totalorder %s518_s14, %s1519_s11 }
 0x194   : > { %p887_p0 = scmp.lt.s32.totalorder %s885_s15, %s881_s23 }
 0x195   : > { %p883_p5 = pnand %p882_p2, %p1520_p4 }
 0x196   : > { %p888_p1 = por %p887_p0, %p886_p12 }
 0x197   : > { %p884_p7 = pneg %p883_p5 }
 0x199   : > { %p889_p10 = pnand %p888_p1, %p884_p7 }
 0x19b   : > { %892 = shalt.err (!%p889_p10)
}
 0x19c   : > { %669 = dma.vmem_to_hbm [thread:$0]  (%p1520_p4), %s521_s3, 256, %s518_s14, %s504_s17  }
 0x19d PF: > { %s1521_s13 = sld [smem:[#allocation16_spill]]  ;;  %p685_p6 = scmp.ge.s32.totalorder %s1017_s27, 2 }
 0x19e   : > { %s1522_s6 = sld [smem:[#allocation25_spill]] }
 0x1a3   : > { %s532_s9 = sand.u32 1, %s1521_s13  }
 0x1a4   : > { %p1523_p13 = scmp.ne.s32.totalorder %s1522_s6, 0  ;;  %s533_s24 = scalar_lea.sflag [#allocation6], %s532_s9 }
 0x1a6   : > { %p681_p8 = pnand %p685_p6, %p1523_p13 }
 0x1a8   : > { %p682_p9 = pneg %p681_p8 }
 0x1aa   : > { %960 = dma.done.wait (%p682_p9), %s533_s24, 256  }
 0x1ab   : > { %962 = vsyncadd (%p682_p9), %s533_s24, 4294967040  ;;  %s26_s27 = sadd.s32 1, %s1017_s27   ;;  %s1525_s15 = sld [smem:[#allocation17_spill]] }
 0x1ac   : > { %p1417_p11 = scmp.ge.s32.totalorder %s26_s27, 6   ;;  %s1526_s16 = sld [smem:[#allocation18_spill]] }
 0x1ad   : > { %s1527_s17 = sld [smem:[#allocation23_spill]]  ;;  %s1530_s18 = smov %s981_s19 }
 0x1ae   : > { %s1528_s8 = sld [smem:[#allocation19_spill]]  ;;  %s1531_s19 = smov %s985_s0 }
 0x1af   : > { %s1529_s22 = sld [smem:[#allocation26_spill]]  ;;  %s1532_s0 = smov %s1237_s10 }
 0x1b0   : > { %s1533_s20 = smov %s993_s21  ;;  %s1535_s23 = smov %s1009_s25 }
 0x1b1   : > { %s1536_s24 = smov %s1013_s26  ;;  %s1537_s25 = smov %s1540_s30 }
 0x1b2   : > { %s1538_s26 = smov %s1544_s4  ;;  %25 = sbr.rel (!%p1417_p11) target bundleno = 18 (0x12), region = 90 }
 0x1b4   : > { %s1534_s21 = smov %s1528_s8 }
 0x1b7   :  { %538 = vsyncpa [#allocation5], 1 }
 0x1b8   :  { %540 = vsyncpa [#allocation5 + $0x1], 1 }
 0x1b9   :  { %541 = vsyncpa [#allocation8], 1 }
 0x1ba   :  { %543 = vsyncpa [#allocation8 + $0x1], 1 }
 0x1bb   :  { %544 = vsyncpa [#allocation6], 1 }
 0x1bc   :  { %546 = vsyncpa [#allocation6 + $0x1], 1 }

</bundles_post_ra>
